<compile_context>
chip_gen: v7x
topology: tpu7x:2x2x1
jax: 0.10.0
libtpu: 0.0.40
codegen_flags: <defaults>
</compile_context>

<pallas_src>
import jax
import jax.numpy as jnp
from jax.experimental import pallas as pl
from jax.experimental.pallas import tpu as pltpu

HIDDEN = 64


def _round_up(x, m):
    return ((x + m - 1) // m) * m


# ------------------------------------------------------------------ packing --
def pack_params(params, in_dim, out_dim, hidden=HIDDEN):
    """Pack the 4 Linear layers into one lane-dense bf16 weight slab + one f32 bias slab.

    All matrices are stored at full W (>=128) lane width, zero-padded; W2 / Whead also
    have their K rows zero-padded to W so the kernel can take full-width views only.

    Weight slab rows (bf16, 16-row aligned offsets):
      [row_w1, row_w1+in_dim) : W1    real in [:, :hidden]
      [row_w2, row_w2+W)      : W2    real in [:hidden, :hidden]
      [row_wh, row_wh+W)      : Whead real in [:hidden, :2*out_dim]  ([Wmu | Wsig])
    Bias slab (f32, (8, W)): row 0 = b1, row 1 = b2, row 2 = [bmu | bsig].
    """
    two_out = 2 * out_dim
    W = _round_up(max(hidden, two_out), 128)       # lane-dense width
    row_w1 = 0
    row_w2 = _round_up(in_dim, 16)                 # bf16 (16,128) sublane-tile alignment
    row_wh = row_w2 + W
    n_rows = row_wh + W

    wslab = jnp.zeros((n_rows, W), jnp.bfloat16)
    wslab = wslab.at[row_w1:row_w1 + in_dim, 0:hidden].set(
        params["w1"].astype(jnp.bfloat16))
    wslab = wslab.at[row_w2:row_w2 + hidden, 0:hidden].set(
        params["w2"].astype(jnp.bfloat16))
    whead = jnp.concatenate([params["wmu"], params["wsig"]], axis=1)
    wslab = wslab.at[row_wh:row_wh + hidden, 0:two_out].set(
        whead.astype(jnp.bfloat16))

    bslab = jnp.zeros((8, W), jnp.float32)
    bslab = bslab.at[0, 0:hidden].set(params["b1"].reshape(-1))
    bslab = bslab.at[1, 0:hidden].set(params["b2"].reshape(-1))
    bhead = jnp.concatenate(
        [params["bmu"].reshape(-1), params["bsig"].reshape(-1)])
    bslab = bslab.at[2, 0:two_out].set(bhead)

    return wslab, bslab, (row_w1, row_w2, row_wh, W)


# ------------------------------------------------------------------- kernel --
def make_actor_forward(in_dim, out_dim, rows, hidden=HIDDEN, tile_b=2048):
    """Returns a jitted forward(obs, wslab, bslab) -> (mu, sigma)."""
    two_out = 2 * out_dim
    row_w1, row_w2, row_wh, W = rows

    def kernel(obs_ref, w_ref, b_ref, out_ref):
        # matmul operands in bf16, accumulate in f32 on the MXU
        x = obs_ref[...].astype(jnp.bfloat16)                      # (TB, in_dim)

        # fc1 + relu  (full-width, lane-dense weight view; padded lanes -> 0)
        w1 = w_ref[row_w1:row_w1 + in_dim, :]                      # bf16 (in_dim, W)
        b1 = b_ref[0:1, :]                                         # f32  (1, W)
        h1 = jnp.dot(x, w1, preferred_element_type=jnp.float32) + b1
        h1 = jnp.maximum(h1, 0.0)                                  # (TB, W)

        # fc2 + relu  (K rows padded to W with zeros -> padded lanes stay 0)
        w2 = w_ref[row_w2:row_w2 + W, :]
        b2 = b_ref[1:2, :]
        h2 = jnp.dot(h1.astype(jnp.bfloat16), w2,
                     preferred_element_type=jnp.float32) + b2
        h2 = jnp.maximum(h2, 0.0)                                  # (TB, W)

        # fused heads: one matmul for the full [mu | sigma | pad] logits block
        wh = w_ref[row_wh:row_wh + W, :]
        bh = b_ref[2:3, :]
        logits = jnp.dot(h2.astype(jnp.bfloat16), wh,
                         preferred_element_type=jnp.float32) + bh  # (TB, W)

        lane = jax.lax.broadcasted_iota(jnp.int32, logits.shape, 1)
        is_mu = lane < out_dim
        is_sig = jnp.logical_and(lane >= out_dim, lane < two_out)

        # mu head: tanh over the full block (EUP), selected on mu lanes below
        mu_full = jnp.tanh(logits)

        # sigma head: softmax masked to the real sigma lanes, exact normalization
        sig_logits = jnp.where(is_sig, logits, -1e30)
        m = jnp.max(sig_logits, axis=-1, keepdims=True)
        e = jnp.where(is_sig, jnp.exp(sig_logits - m), 0.0)
        denom = jnp.sum(e, axis=-1, keepdims=True)
        sigma_full = e / denom                                     # exact divide

        # single unmasked, lane-dense (width W) output store
        out_ref[...] = jnp.where(is_mu, mu_full, sigma_full)

    @jax.jit
    def forward(obs, wslab, bslab):
        B = obs.shape[0]
        B8 = _round_up(max(B, 1), 8)
        # Large tiles amortize per-grid-step overhead; keep nb >= 2 whenever the batch
        # can be split so ("parallel",) shards across both v7x TensorCores.
        if B8 > 8:
            TB = min(tile_b, _round_up(-(-B8 // 2), 8))
        else:
            TB = B8
        nb = pl.cdiv(B8, TB)
        B_pad = nb * TB
        if B_pad != B:
            obs = jnp.pad(obs, ((0, B_pad - B), (0, 0)))

        flops = 2 * B_pad * (in_dim * hidden + hidden * hidden + hidden * two_out)
        transcendentals = 2 * B_pad * W                      # tanh + exp per lane
        bytes_accessed = (B_pad * in_dim * obs.dtype.itemsize
                          + B_pad * W * 4
                          + wslab.size * 2 + bslab.size * 4)

        out = pl.pallas_call(
            kernel,
            out_shape=jax.ShapeDtypeStruct((B_pad, W), jnp.float32),
            grid=(nb,),
            in_specs=[
                pl.BlockSpec((TB, in_dim), lambda i: (i, 0)),
                # constant index_map -> weight/bias slabs resident across grid steps
                pl.BlockSpec(wslab.shape, lambda i: (0, 0)),
                pl.BlockSpec(bslab.shape, lambda i: (0, 0)),
            ],
            out_specs=pl.BlockSpec((TB, W), lambda i: (i, 0)),
            compiler_params=pltpu.CompilerParams(
                dimension_semantics=("parallel",)),
            cost_estimate=pl.CostEstimate(
                flops=flops,
                transcendentals=transcendentals,
                bytes_accessed=bytes_accessed),
        )(obs, wslab, bslab)

        mu = out[:B, 0:out_dim]
        sigma = out[:B, out_dim:two_out]
        return mu, sigma

    return forward


# -------------------------------------------------------------------- setup --
def init_params(key, in_dim, out_dim, hidden=HIDDEN):
    """Synthetic init matching nn.Linear shapes (weights pre-transposed to (in, out))."""
    ks = jax.random.split(key, 8)

    def linear(kw, kb, fan_in, fan_out):
        bound = 1.0 / jnp.sqrt(jnp.float32(fan_in))
        w = jax.random.uniform(kw, (fan_in, fan_out), jnp.float32, -bound, bound)
        b = jax.random.uniform(kb, (1, fan_out), jnp.float32, -bound, bound)
        return w, b

    w1, b1 = linear(ks[0], ks[1], in_dim, hidden)
    w2, b2 = linear(ks[2], ks[3], hidden, hidden)
    wmu, bmu = linear(ks[4], ks[5], hidden, out_dim)
    wsig, bsig = linear(ks[6], ks[7], hidden, out_dim)
    return dict(w1=w1, b1=b1, w2=w2, b2=b2,
                wmu=wmu, bmu=bmu, wsig=wsig, bsig=bsig)


def reference_forward_f32(obs, p):
    """Pure-JAX f32 reference mirroring the PyTorch forward."""
    h1 = jnp.maximum(obs @ p["w1"] + p["b1"], 0.0)
    h2 = jnp.maximum(h1 @ p["w2"] + p["b2"], 0.0)
    mu = jnp.tanh(h2 @ p["wmu"] + p["bmu"])
    sigma = jax.nn.softmax(h2 @ p["wsig"] + p["bsig"], axis=-1)
    return mu, sigma


def reference_forward_bf16(obs, p, out_dim):
    """Reference that mimics the kernel's bf16-operand / f32-accumulate numerics."""
    bf = jnp.bfloat16
    h1 = jnp.maximum(
        jnp.dot(obs.astype(bf), p["w1"].astype(bf),
                preferred_element_type=jnp.float32) + p["b1"], 0.0)
    h2 = jnp.maximum(
        jnp.dot(h1.astype(bf), p["w2"].astype(bf),
                preferred_element_type=jnp.float32) + p["b2"], 0.0)
    wh = jnp.concatenate([p["wmu"], p["wsig"]], axis=1).astype(bf)
    bh = jnp.concatenate([p["bmu"], p["bsig"]], axis=1)
    logits = jnp.dot(h2.astype(bf), wh,
                     preferred_element_type=jnp.float32) + bh
    mu = jnp.tanh(logits[:, :out_dim])
    sigma = jax.nn.softmax(logits[:, out_dim:], axis=-1)
    return mu, sigma


if __name__ == "__main__":
    key = jax.random.PRNGKey(0)
    k_obs, k_params = jax.random.split(key)

    B, in_dim, out_dim = 8, 16, 4
    obs = jax.random.normal(k_obs, (B, in_dim), jnp.float32)
    params = init_params(k_params, in_dim, out_dim)

    wslab, bslab, rows = pack_params(params, in_dim, out_dim)
    forward = make_actor_forward(in_dim, out_dim, rows)

    mu, sigma = forward(obs, wslab, bslab)
    jax.block_until_ready((mu, sigma))

    assert mu.shape == (B, out_dim) and sigma.shape == (B, out_dim)

    mu_bf, sigma_bf = reference_forward_bf16(obs, params, out_dim)
    mu_f32, sigma_f32 = reference_forward_f32(obs, params)

    # tight check against the bf16-operand reference (same numerics as the kernel)
    assert jnp.allclose(mu, mu_bf, atol=2e-3, rtol=2e-3)
    assert jnp.allclose(sigma, sigma_bf, atol=5e-3, rtol=5e-3)
    # looser check that the original f32 PyTorch semantics are preserved
    # (weights are bf16-quantized on the MXU; semantic deviation bounded by tolerance)
    assert jnp.allclose(mu, mu_f32, atol=3e-2, rtol=3e-2)
    assert jnp.allclose(sigma, sigma_f32, atol=3e-2, rtol=3e-2)
    # exact-divide softmax: rows sum to 1 within f32 rounding
    assert jnp.allclose(jnp.sum(sigma, axis=-1), 1.0, atol=1e-5)

    print("KERNEL_OK")
</pallas_src>

<mosaic_0001>
module attributes {stable_mosaic.version = 11 : i64} {
  func.func @kernel(%arg0: i32, %arg1: memref<8x16xf32, #tpu.memory_space<vmem>>, %arg2: memref<272x128xbf16, #tpu.memory_space<vmem>>, %arg3: memref<8x128xf32, #tpu.memory_space<vmem>>, %arg4: memref<8x128xf32, #tpu.memory_space<vmem>>) attributes {dimension_semantics = [#tpu.dimension_semantics<parallel>], iteration_bounds = array<i64: 1>, scalar_prefetch = 0 : i64, scratch_operands = 0 : i64, tpu.core_type = #tpu.core_type<tc>, window_params = [{transform_indices = @transform_0, window_bounds = array<i64: 8, 16>}, {pipeline_mode = #tpu.pipeline_mode<synchronous>, transform_indices = @transform_1, window_bounds = array<i64: 272, 128>}, {pipeline_mode = #tpu.pipeline_mode<synchronous>, transform_indices = @transform_2, window_bounds = array<i64: 8, 128>}, {transform_indices = @transform_3, window_bounds = array<i64: 8, 128>}]} {
    %c0 = arith.constant 0 : index
    %c0_0 = arith.constant 0 : index
    %0 = vector.load %arg1[%c0, %c0_0] : memref<8x16xf32, #tpu.memory_space<vmem>>, vector<8x16xf32>
    %1 = arith.truncf %0 : vector<8x16xf32> to vector<8x16xbf16>
    %c0_1 = arith.constant 0 : index
    %c0_2 = arith.constant 0 : index
    %2 = vector.load %arg2[%c0_1, %c0_2] : memref<272x128xbf16, #tpu.memory_space<vmem>>, vector<16x128xbf16>
    %c0_3 = arith.constant 0 : index
    %c0_4 = arith.constant 0 : index
    %3 = vector.load %arg3[%c0_3, %c0_4] : memref<8x128xf32, #tpu.memory_space<vmem>>, vector<1x128xf32>
    %cst = arith.constant dense<0.000000e+00> : vector<8x128xf32>
    %4 = tpu.matmul %1, %2, %cst {dimension_numbers = #tpu.dot_dimension_numbers<[1], [0], [0], [1], [0, 0, 1, 1], [], []>} : vector<8x16xbf16>, vector<16x128xbf16>, vector<8x128xf32> -> vector<8x128xf32>
    %5 = vector.broadcast %3 : vector<1x128xf32> to vector<8x128xf32>
    %6 = arith.addf %4, %5 : vector<8x128xf32>
    %cst_5 = arith.constant 0.000000e+00 : f32
    %7 = vector.broadcast %cst_5 : f32 to vector<8x128xf32>
    %8 = arith.maximumf %6, %7 : vector<8x128xf32>
    %c16 = arith.constant 16 : index
    %c0_6 = arith.constant 0 : index
    %9 = vector.load %arg2[%c16, %c0_6] : memref<272x128xbf16, #tpu.memory_space<vmem>>, vector<128x128xbf16>
    %c1 = arith.constant 1 : index
    %c0_7 = arith.constant 0 : index
    %10 = vector.load %arg3[%c1, %c0_7] : memref<8x128xf32, #tpu.memory_space<vmem>>, vector<1x128xf32>
    %11 = arith.truncf %8 : vector<8x128xf32> to vector<8x128xbf16>
    %cst_8 = arith.constant dense<0.000000e+00> : vector<8x128xf32>
    %12 = tpu.matmul %11, %9, %cst_8 {dimension_numbers = #tpu.dot_dimension_numbers<[1], [0], [0], [1], [0, 0, 1, 1], [], []>} : vector<8x128xbf16>, vector<128x128xbf16>, vector<8x128xf32> -> vector<8x128xf32>
    %13 = vector.broadcast %10 : vector<1x128xf32> to vector<8x128xf32>
    %14 = arith.addf %12, %13 : vector<8x128xf32>
    %cst_9 = arith.constant 0.000000e+00 : f32
    %15 = vector.broadcast %cst_9 : f32 to vector<8x128xf32>
    %16 = arith.maximumf %14, %15 : vector<8x128xf32>
    %c144 = arith.constant 144 : index
    %c0_10 = arith.constant 0 : index
    %17 = vector.load %arg2[%c144, %c0_10] : memref<272x128xbf16, #tpu.memory_space<vmem>>, vector<128x128xbf16>
    %c2 = arith.constant 2 : index
    %c0_11 = arith.constant 0 : index
    %18 = vector.load %arg3[%c2, %c0_11] : memref<8x128xf32, #tpu.memory_space<vmem>>, vector<1x128xf32>
    %19 = arith.truncf %16 : vector<8x128xf32> to vector<8x128xbf16>
    %cst_12 = arith.constant dense<0.000000e+00> : vector<8x128xf32>
    %20 = tpu.matmul %19, %17, %cst_12 {dimension_numbers = #tpu.dot_dimension_numbers<[1], [0], [0], [1], [0, 0, 1, 1], [], []>} : vector<8x128xbf16>, vector<128x128xbf16>, vector<8x128xf32> -> vector<8x128xf32>
    %21 = vector.broadcast %18 : vector<1x128xf32> to vector<8x128xf32>
    %22 = arith.addf %20, %21 : vector<8x128xf32>
    %23 = tpu.iota {dimensions = array<i32: 1>} : vector<8x128xi32>
    %c4_i32 = arith.constant 4 : i32
    %24 = vector.broadcast %c4_i32 : i32 to vector<8x128xi32>
    %25 = arith.cmpi slt, %23, %24 : vector<8x128xi32>
    %c4_i32_13 = arith.constant 4 : i32
    %26 = vector.broadcast %c4_i32_13 : i32 to vector<8x128xi32>
    %27 = arith.cmpi sge, %23, %26 : vector<8x128xi32>
    %c8_i32 = arith.constant 8 : i32
    %28 = vector.broadcast %c8_i32 : i32 to vector<8x128xi32>
    %29 = arith.cmpi slt, %23, %28 : vector<8x128xi32>
    %30 = arith.andi %27, %29 : vector<8x128xi1>
    %31 = math.tanh %22 : vector<8x128xf32>
    %cst_14 = arith.constant -1.000000e+30 : f32
    %32 = vector.broadcast %cst_14 : f32 to vector<8x128xf32>
    %33 = arith.select %30, %22, %32 : vector<8x128xi1>, vector<8x128xf32>
    %cst_15 = arith.constant dense<0xFF800000> : vector<8xf32>
    %34 = vector.multi_reduction <maximumf>, %33, %cst_15 [1] : vector<8x128xf32> to vector<8xf32>
    %35 = vector.shape_cast %34 : vector<8xf32> to vector<8x1xf32>
    %36 = vector.broadcast %35 : vector<8x1xf32> to vector<8x128xf32>
    %37 = arith.subf %33, %36 : vector<8x128xf32>
    %38 = math.exp %37 : vector<8x128xf32>
    %cst_16 = arith.constant 0.000000e+00 : f32
    %39 = vector.broadcast %cst_16 : f32 to vector<8x128xf32>
    %40 = arith.select %30, %38, %39 : vector<8x128xi1>, vector<8x128xf32>
    %cst_17 = arith.constant dense<0.000000e+00> : vector<8xf32>
    %41 = vector.multi_reduction <add>, %40, %cst_17 [1] : vector<8x128xf32> to vector<8xf32>
    %42 = vector.shape_cast %41 : vector<8xf32> to vector<8x1xf32>
    %43 = vector.broadcast %42 : vector<8x1xf32> to vector<8x128xf32>
    %44 = arith.divf %40, %43 : vector<8x128xf32>
    %45 = arith.select %25, %31, %44 : vector<8x128xi1>, vector<8x128xf32>
    %c0_18 = arith.constant 0 : index
    %c0_19 = arith.constant 0 : index
    %46 = vector.load %arg4[%c0_18, %c0_19] : memref<8x128xf32, #tpu.memory_space<vmem>>, vector<8x128xf32>
    tpu.vector_store %arg4[%c0_18, %c0_19], %45 {strides = array<i32>} : memref<8x128xf32, #tpu.memory_space<vmem>>, vector<8x128xf32>,
    return
  }
  func.func @transform_0(%arg0: i32) -> (i32, i32) {
    %c0_i32 = arith.constant 0 : i32
    %c0_i32_0 = arith.constant 0 : i32
    return %arg0, %c0_i32 : i32, i32
  }
  func.func @transform_1(%arg0: i32) -> (i32, i32) {
    %c0_i32 = arith.constant 0 : i32
    %c0_i32_0 = arith.constant 0 : i32
    %c0_i32_1 = arith.constant 0 : i32
    return %c0_i32, %c0_i32_0 : i32, i32
  }
  func.func @transform_2(%arg0: i32) -> (i32, i32) {
    %c0_i32 = arith.constant 0 : i32
    %c0_i32_0 = arith.constant 0 : i32
    %c0_i32_1 = arith.constant 0 : i32
    return %c0_i32, %c0_i32_0 : i32, i32
  }
  func.func @transform_3(%arg0: i32) -> (i32, i32) {
    %c0_i32 = arith.constant 0 : i32
    %c0_i32_0 = arith.constant 0 : i32
    return %arg0, %c0_i32 : i32, i32
  }
}

</mosaic_0001>

<bundles_post_ra>
// kernel: forward.1
= control target key start
LH: loop header
LB: loop body
LE: loop exit
PB: predicated region body
PF: predicated region fallthrough
CT: control target
= control target key end

     0   :  { %8 = vsyncpa [#allocation3], 0  ;;  %s632_s0 = inlined_call_operand.hbm [shape: f32[8,16], index: 0, kind: input, shape index: {}]   ;;  %s633_s1 = inlined_call_operand.hbm [shape: bf16[272,128], index: 1, kind: input, shape index: {}]   ;;  %s634_s2 = inlined_call_operand.hbm [shape: f32[8,128], index: 2, kind: input, shape index: {}]   ;;  %s635_s3 = inlined_call_operand.vmem [shape: f32[8,128], index: 3, kind: output, shape index: {}]  }
   0x1   :  { %9 = vsyncpa [#allocation5], 0  ;;  %s546_s12 = smov [#allocation4]   ;;  %s476_s16 = scalar_lea.hbm %s633_s1, 2176 }
   0x2   :  { %s25_s13 = sshll.u32 %s546_s12, 4  ;;  %p477_p0 = scmp.ne.s32.totalorder %s633_s1, %s476_s16  ;;  %s26_s13 = int_to_ptr.vmem [resolvable:$true] %s25_s13 }
   0x3   :  { %p480_p1 = scmp.lt.u32.totalorder %s476_s16, %s633_s1 }
   0x5   :  { %p482_p2 = pnand %p480_p1, %p477_p0 }
   0x7   :  { %485 = shalt.err (!%p482_p2)
}
   0x8   :  { %s486_s21 = scalar_lea.vmem %s26_s13, 2176  ;;  %p491_p4 = scmp.lt.s32.totalorder %s26_s13, %s26_s13 }
   0x9   :  { %p487_p3 = scmp.ne.s32.totalorder %s26_s13, %s486_s21  ;;  %p492_p5 = scmp.lt.s32.totalorder %s486_s21, %s486_s21 }
   0xb   :  { %p493_p6 = por %p492_p5, %p491_p4 }
   0xd   :  { %p494_p7 = pnand %p493_p6, %p487_p3 }
   0xf   :  { %497 = shalt.err (!%p494_p7)
}
  0x10   :  { %s547_s22 = smov 64   ;;  %s548_s23 = smov 4  }
  0x11   :  { %31 = dma.hbm_to_vmem [thread:$0]  %s633_s1, 2176, %s26_s13, [#allocation5], %s547_s22, %s547_s22, %s548_s23  }
  0x12   :  { %s549_s26 = smov [#allocation2]   ;;  %s550_s28 = smov [#allocation6]  }
  0x13   :  { %s16_s27 = sshll.u32 %s549_s26, 4  ;;  %s38_s29 = sshll.u32 %s550_s28, 4  ;;  %s17_s27 = int_to_ptr.vmem [resolvable:$true] %s16_s27  ;;  %s39_s29 = int_to_ptr.vmem [resolvable:$true] %s38_s29 }
  0x14   :  { %s498_s5 = scalar_lea.hbm %s632_s0, 128 }
  0x15   :  { %p499_p8 = scmp.ne.s32.totalorder %s632_s0, %s498_s5  ;;  %p502_p9 = scmp.lt.u32.totalorder %s498_s5, %s632_s0 }
  0x17   :  { %p504_p10 = pnand %p502_p9, %p499_p8 }
  0x19   :  { %507 = shalt.err (!%p504_p10)
}
  0x1a   :  { %s508_s1 = scalar_lea.vmem %s17_s27, 128  ;;  %p513_p12 = scmp.lt.s32.totalorder %s17_s27, %s17_s27 }
  0x1b   :  { %p509_p11 = scmp.ne.s32.totalorder %s17_s27, %s508_s1  ;;  %p514_p13 = scmp.lt.s32.totalorder %s508_s1, %s508_s1 }
  0x1d   :  { %p515_p0 = por %p514_p13, %p513_p12 }
  0x1f   :  { %p516_p1 = pnand %p515_p0, %p509_p11 }
  0x21   :  { %519 = shalt.err (!%p516_p1)
}
  0x22   :  { %19 = dma.hbm_to_vmem [thread:$0]  %s632_s0, 128, %s17_s27, [#allocation3]  }
  0x23   :  { %s520_s14 = scalar_lea.hbm %s634_s2, 128 }
  0x24   :  { %p521_p2 = scmp.ne.s32.totalorder %s634_s2, %s520_s14  ;;  %p524_p3 = scmp.lt.u32.totalorder %s520_s14, %s634_s2 }
  0x26   :  { %p526_p4 = pnand %p524_p3, %p521_p2 }
  0x28   :  { %529 = shalt.err (!%p526_p4)
}
  0x29   :  { %s530_s19 = scalar_lea.vmem %s39_s29, 128  ;;  %p535_p6 = scmp.lt.s32.totalorder %s39_s29, %s39_s29 }
  0x2a   :  { %p531_p5 = scmp.ne.s32.totalorder %s39_s29, %s530_s19  ;;  %p536_p7 = scmp.lt.s32.totalorder %s530_s19, %s530_s19 }
  0x2c   :  { %p537_p8 = por %p536_p7, %p535_p6 }
  0x2e   :  { %p538_p9 = pnand %p537_p8, %p531_p5 }
  0x30   :  { %541 = shalt.err (!%p538_p9)
}
  0x31   :  { %41 = dma.hbm_to_vmem [thread:$0]  %s634_s2, 128, %s39_s29, [#allocation5]  }
  0x32   :  { %542 = dma.done.wait [#allocation3], 128  }
  0x33   :  { %543 = vsyncadd [#allocation3], 4294967168 }
  0x34   :  { %544 = dma.done.wait [#allocation5], 2304  }
  0x35   :  { %545 = vsyncadd [#allocation5], 4294964992  ;;  %v551_v0 = vmov 0.0   ;;  %vm552_vm0 = vmmov 0   ;;  %v453_v1 = vld [vmem:[#allocation4] sm:$0xff]   ;;  %v52_v2 = vld [vmem:[#allocation2] sm:$0xff]  ;;  %v333_v36 = vlaneseq }
  0x36   :  { %400 = vmatprep.subr.bf16.mxu0 %v551_v0  ;;  %402 = vmatprep.mubr.msk.bf16.mxu0 %vm552_vm0, %v551_v0  ;;  %v53_v3 = vpack.c.bf16 %v52_v2, %v52_v2  ;;  %vm67_vm1 = vcmask 130048   ;;  %v454_v4 = vld [vmem:[#allocation4 + $0x8] sm:$0xff]   ;;  %v455_v5 = vld [vmem:[#allocation4 + $0x10] sm:$0xff]   ;;  %v456_v6 = vld [vmem:[#allocation4 + $0x18] sm:$0xff]  }
  0x37   :  { %406 = vmatprep.subr.bf16.mxu1 %v551_v0  ;;  %422 = vmatprep.mubr.msk.bf16.mxu1 %vm552_vm0, %v551_v0  ;;  %v457_v7 = vld [vmem:[#allocation4 + $0x20] sm:$0xff]   ;;  %v458_v8 = vld [vmem:[#allocation4 + $0x28] sm:$0xff]   ;;  %v459_v9 = vld [vmem:[#allocation4 + $0x30] sm:$0xff]   ;;  %v334_v37 = vand.u32 127, %v333_v36 }
  0x38   :  { %401 = vmatpush3.bf16.msra.mxu0 %v453_v1  ;;  %407 = vmatpush3.bf16.msra.mxu1 %v454_v4  ;;  %v460_v10 = vld [vmem:[#allocation4 + $0x38] sm:$0xff]   ;;  %v461_v11 = vld [vmem:[#allocation4 + $0x40] sm:$0xff]   ;;  %v462_v12 = vld [vmem:[#allocation4 + $0x48] sm:$0xff]  }
  0x39   :  { %426 = vmatprep.subr.bf16.mxu0 %v551_v0  ;;  %408 = vmatprep.subr.bf16.mxu1 %v551_v0  ;;  %v463_v13 = vld [vmem:[#allocation4 + $0x50] sm:$0xff]   ;;  %v464_v14 = vld [vmem:[#allocation4 + $0x58] sm:$0xff]   ;;  %v465_v15 = vld [vmem:[#allocation4 + $0x60] sm:$0xff]   ;;  %vm336_vm2 = vcmp.ge.s32.totalorder %v334_v37, 4  ;;  %vm337_vm3 = vcmp.lt.s32.totalorder %v334_v37, 8  ;;  %vm335_vm5 = vcmp.lt.s32.totalorder %v334_v37, 4 }
  0x3a   :  { %v466_v16 = vld [vmem:[#allocation4 + $0x68] sm:$0xff]   ;;  %v467_v17 = vld [vmem:[#allocation4 + $0x70] sm:$0xff]   ;;  %v468_v26 = vld [vmem:[#allocation4 + $0x78] sm:$0xff]  }
  0x3b   :  { %403 = vmatmul.mubr.msk.bf16.vlgmr.msra.gmra.mrb[0].mxu0 %vm67_vm1, %v53_v3  ;;  %v359_v18 = vld [vmem:[#allocation6] ss:$0 sm:$0xff]  ;;  %v469_v27 = vld [vmem:[#allocation4 + $0x80] sm:$0xff]   ;;  %v362_v28 = vld [vmem:[#allocation6 + $0x1] ss:$0 sm:$0xff] }
  0x3c   :  { %442 = vmatprep.mubr.msk.bf16.mxu0 %vm552_vm0, %v551_v0  ;;  %409 = vmatpush3.bf16.msra.mxu1 %v455_v5  ;;  %v371_v38 = vld [vmem:[#allocation6 + $0x2] ss:$0 sm:$0xff]  ;;  %vm338_vm4 = vmand %vm336_vm2, %vm337_vm3 }
  0x3d   :  { %410 = vmatprep.subr.bf16.mxu1 %v551_v0  ;;  %427 = vmatpush3.bf16.msra.mxu0 %v462_v12 }
  0x3e   :  { %428 = vmatprep.subr.bf16.mxu0 %v551_v0 }
  0x40   :  { %411 = vmatpush3.bf16.msra.mxu1 %v456_v6 }
  0x41   :  { %412 = vmatprep.subr.bf16.mxu1 %v551_v0  ;;  %429 = vmatpush3.bf16.msra.mxu0 %v463_v13 }
  0x42   :  { %430 = vmatprep.subr.bf16.mxu0 %v551_v0 }
  0x44   :  { %413 = vmatpush3.bf16.msra.mxu1 %v457_v7 }
  0x45   :  { %414 = vmatprep.subr.bf16.mxu1 %v551_v0  ;;  %431 = vmatpush3.bf16.msra.mxu0 %v464_v14 }
  0x46   :  { %432 = vmatprep.subr.bf16.mxu0 %v551_v0 }
  0x48   :  { %415 = vmatpush3.bf16.msra.mxu1 %v458_v8 }
  0x49   :  { %416 = vmatprep.subr.bf16.mxu1 %v551_v0  ;;  %433 = vmatpush3.bf16.msra.mxu0 %v465_v15 }
  0x4a   :  { %434 = vmatprep.subr.bf16.mxu0 %v551_v0 }
  0x4c   :  { %417 = vmatpush3.bf16.msra.mxu1 %v459_v9 }
  0x4d   :  { %418 = vmatprep.subr.bf16.mxu1 %v551_v0  ;;  %435 = vmatpush3.bf16.msra.mxu0 %v466_v16 }
  0x4e   :  { %436 = vmatprep.subr.bf16.mxu0 %v551_v0 }
  0x50   :  { %419 = vmatpush3.bf16.msra.mxu1 %v460_v10 }
  0x51   :  { %420 = vmatprep.subr.bf16.mxu1 %v551_v0  ;;  %437 = vmatpush3.bf16.msra.mxu0 %v467_v17 }
  0x52   :  { %438 = vmatprep.subr.bf16.mxu0 %v551_v0 }
  0x54   :  { %421 = vmatpush3.bf16.msra.mxu1 %v461_v11 }
  0x55   :  { %439 = vmatpush3.bf16.msra.mxu0 %v468_v26 }
  0x56   :  { %440 = vmatprep.subr.bf16.mxu0 %v551_v0 }
  0x59   :  { %441 = vmatpush3.bf16.msra.mxu0 %v469_v27 }
 0x10e   :  { %v105_v19 = vpop.f32.mrb[0].mxu0 }
 0x10f   :  { %v106_v20 = vadd.f32 %v359_v18, %v105_v19  ;;  %v404_v21 = vpop.f32.mrb[1].mxu0 }
 0x110   :  { %v108_v22 = vpop.f32.mrb[2].mxu0 }
 0x111   :  { %v111_v23 = vmax.f32 %v106_v20, 0.0  ;;  %v405_v24 = vpop.f32.mrb[3].mxu0 }
 0x113   :  { %v129_v25 = vpack.c.bf16 %v111_v23, %v111_v23 }
 0x115   :  { %423 = vmatmul.mubr.bf16.vlgmr.msra.gmra.mrb[0].mxu1 %v129_v25 }
 0x1e8   :  { %v216_v29 = vpop.f32.mrb[0].mxu1 }
 0x1e9   :  { %v217_v30 = vadd.f32 %v362_v28, %v216_v29  ;;  %v424_v31 = vpop.f32.mrb[1].mxu1 }
 0x1ea   :  { %v219_v32 = vpop.f32.mrb[2].mxu1 }
 0x1eb   :  { %v222_v33 = vmax.f32 %v217_v30, 0.0  ;;  %v425_v34 = vpop.f32.mrb[3].mxu1 }
 0x1ed   :  { %v240_v35 = vpack.c.bf16 %v222_v33, %v222_v33 }
 0x1ef   :  { %443 = vmatmul.mubr.bf16.vlgmr.msra.gmra.mrb[4].mxu0 %v240_v35 }
 0x2c2   :  { %v327_v39 = vpop.f32.mrb[4].mxu0 }
 0x2c3   :  { %v328_v40 = vadd.f32 %v371_v38, %v327_v39  ;;  %v444_v41 = vpop.f32.mrb[5].mxu0 }
 0x2c4   :  { %v330_v42 = vpop.f32.mrb[6].mxu0 }
 0x2c5   :  { %v445_v43 = vpop.f32.mrb[7].mxu0  ;;  %v340_v44 = vsel %vm338_vm4, %v328_v40, -1e+30 }
 0x2c6   :  { %341 = vmax.xlane.f32.xlu0 %v340_v44 }
 0x353   :  { %v342_v45 = vpop.xlane.xlu0 %341 }
 0x354   :  { %v343_v46 = vsub.f32 %v340_v44, %v342_v45 }
 0x356   :  { %v344_v47 = vmul.f32 1.442695, %v343_v46 }
 0x358   :  { %470 = vpow2.f32 %v344_v47 }
 0x362   :  { %v471_v48 = vpop.eup %470 }
 0x363   :  { %v346_v49 = vsel %vm338_vm4, %v471_v48, 0.0 }
 0x364   :  { %347 = vadd.xlane.f32.xlu0 %v346_v49 }
 0x3f1   :  { %v348_v50 = vpop.xlane.xlu0 %347 }
 0x3f2   :  { %472 = vrcp.f32 %v348_v50 }
 0x3f3   :  { %474 = vtanh.f32 %v328_v40 }
 0x3fc   :  { %v473_v51 = vpop.eup %472 }
 0x3fd   :  { %v350_v52 = vmul.f32 %v473_v51, %v346_v49  ;;  %v475_v53 = vpop.eup %474 }
 0x3ff   :  { %v351_v54 = vsel %vm335_vm5, %v475_v53, %v350_v52 }
 0x400   :  { %352 = vst [vmem:[%s635_s3] sm:$0xff] %v351_v54 }
 0x401   :  { %357 = vsyncpa [#allocation3], 1 }
 0x402   :  { %358 = vsyncpa [#allocation5], 1 }

</bundles_post_ra>
